<compile_context>
chip_gen: v7x
topology: tpu7x:2x2x1
jax: 0.10.0
libtpu: 0.0.40
codegen_flags: <defaults>
</compile_context>

<pallas_src>
import functools

import jax
import jax.numpy as jnp
from jax.experimental import pallas as pl
from jax.experimental.pallas import tpu as pltpu

THRESH = 0.5
DECAY = 0.2


def _round_up(x, m):
    return ((x + m - 1) // m) * m


def scnn_kernel(x_ref, u_ref, w1_ref, b1_ref, w2_ref, b2_ref,
                out_ref, cnt_ref, *, time_window, valid_rows):
    """Processes one batch tile; the full time loop runs inside the kernel."""
    Bt, _ = x_ref.shape
    H1p = w1_ref.shape[1]
    H2p = w2_ref.shape[1]

    x_img = x_ref[...]          # (Bt, IN)  f32 pixel intensities (padded rows = -1)
    w1 = w1_ref[...]            # (IN, H1p) bf16
    w2 = w2_ref[...]            # (H1p, H2p) bf16
    b1 = b1_ref[...]            # (1, H1p)  f32
    b2 = b2_ref[...]            # (1, H2p)  f32

    # rows beyond the true batch size are padding; exclude them from the count
    row_ids = (jax.lax.broadcasted_iota(jnp.int32, (Bt, 1), 0)
               + pl.program_id(0) * Bt)
    valid = (row_ids < valid_rows).astype(jnp.float32)          # (Bt, 1)

    def step(t, carry):
        h1_mem, h1_spk, h2_mem, h2_spk, h2_sum, cnt = carry

        # Bernoulli spike encoding: x = (intensity > U[0,1))
        x = (x_img > u_ref[t]).astype(jnp.float32)

        # ---- layer 1 LIF (state math kept in f32; MXU operands bf16) ----
        i1 = jnp.dot(x.astype(jnp.bfloat16), w1,
                     preferred_element_type=jnp.float32) + b1
        md1 = h1_mem * DECAY
        m1 = md1 - md1 * h1_spk + i1
        s1 = (m1 > THRESH).astype(jnp.float32)

        # ---- layer 2 LIF ----
        i2 = jnp.dot(s1.astype(jnp.bfloat16), w2,
                     preferred_element_type=jnp.float32) + b2
        md2 = h2_mem * DECAY
        m2 = md2 - md2 * h2_spk + i2
        s2 = (m2 > THRESH).astype(jnp.float32)

        # spike count over input spikes and hidden-layer-1 spikes (valid rows
        # only); per-step sums are exact in f32, accumulation is int32
        step_cnt = (jnp.sum(x * valid, keepdims=True)
                    + jnp.sum(s1 * valid, keepdims=True))
        cnt = cnt + step_cnt.astype(jnp.int32)

        return (m1, s1, m2, s2, h2_sum + s2, cnt)

    init = (jnp.zeros((Bt, H1p), jnp.float32),      # h1_mem
            jnp.zeros((Bt, H1p), jnp.float32),      # h1_spike
            jnp.zeros((Bt, H2p), jnp.float32),      # h2_mem
            jnp.zeros((Bt, H2p), jnp.float32),      # h2_spike
            jnp.zeros((Bt, H2p), jnp.float32),      # h2_sumspike
            jnp.zeros((1, 1), jnp.int32))           # spike count
    _, _, _, _, h2_sum, cnt = jax.lax.fori_loop(0, time_window, step, init)

    out_ref[...] = h2_sum * (1.0 / time_window)
    # (8,128)-aligned, lane-dense count block per tile; wrapper reads [0, 0]
    cnt_ref[...] = jnp.broadcast_to(cnt, cnt_ref.shape)


def scnn_forward(x_input, w1, b1, w2, b2, *, key, time_window=20, batch_tile=128):
    """STBP SCNN forward.

    x_input : (B, 1, 28, 28) intensities in [0, 1]
    w1      : (784, H1) fc1 weight stored (in, out)  (== PyTorch W1.T)
    b1      : (H1,) ; w2 : (H1, H2) ; b2 : (H2,)
    Returns (outputs (B, H2), count_add_1, count_add_2, count_spike).
    """
    B = x_input.shape[0]
    x = x_input.reshape(B, -1).astype(jnp.float32)          # like input.view(B, -1)
    IN, H1 = w1.shape
    H2 = w2.shape[1]
    assert x.shape[1] == IN

    # lane-pad hidden widths to multiples of 128 (zero-padded weights/biases
    # keep padded-column membranes at 0 < thresh, so they never spike)
    H1p = _round_up(H1, 128)
    H2p = _round_up(H2, 128)
    # NOTE: bf16 weight storage is the only numerical approximation vs the
    # f32 PyTorch reference (spike LHS values 0/1 are exact in bf16).
    w1p = jnp.zeros((IN, H1p), jnp.float32).at[:, :H1].set(w1).astype(jnp.bfloat16)
    b1p = jnp.zeros((1, H1p), jnp.float32).at[:, :H1].set(b1.reshape(1, H1))
    w2p = jnp.zeros((H1p, H2p), jnp.float32).at[:H1, :H2].set(w2).astype(jnp.bfloat16)
    b2p = jnp.zeros((1, H2p), jnp.float32).at[:, :H2].set(b2.reshape(1, H2))

    # sublane-pad / tile the batch; padded rows get intensity -1 so they never
    # emit input spikes, and their layer-1 spikes are masked out of the count
    btile = min(batch_tile, _round_up(B, 8))
    Bpad = _round_up(B, btile)
    num_tiles = Bpad // btile
    if Bpad != B:
        x = jnp.concatenate(
            [x, jnp.full((Bpad - B, IN), -1.0, jnp.float32)], axis=0)

    # Bernoulli thresholds: one fresh U[0,1) per pixel per time step.
    # TODO(synk): on real TPU this could use pltpu.prng_random_bits in-kernel to
    # avoid materializing (T, B, 784) randoms, but that primitive has no
    # CPU/interpret lowering, so the randoms are generated host-side instead.
    u = jax.random.uniform(key, (time_window, Bpad, IN), jnp.float32)

    kernel = functools.partial(scnn_kernel,
                               time_window=time_window, valid_rows=B)

    out, cnt = pl.pallas_call(
        kernel,
        out_shape=(
            jax.ShapeDtypeStruct((Bpad, H2p), jnp.float32),
            jax.ShapeDtypeStruct((num_tiles * 8, 128), jnp.int32),
        ),
        grid=(num_tiles,),
        in_specs=[
            pl.BlockSpec((btile, IN), lambda i: (i, 0)),                 # x
            pl.BlockSpec((time_window, btile, IN), lambda i: (0, i, 0)), # uniforms
            pl.BlockSpec((IN, H1p), lambda i: (0, 0)),                   # w1
            pl.BlockSpec((1, H1p), lambda i: (0, 0)),                    # b1
            pl.BlockSpec((H1p, H2p), lambda i: (0, 0)),                  # w2
            pl.BlockSpec((1, H2p), lambda i: (0, 0)),                    # b2
        ],
        out_specs=(
            pl.BlockSpec((btile, H2p), lambda i: (i, 0)),
            pl.BlockSpec((8, 128), lambda i: (i, 0)),
        ),
        compiler_params=pltpu.CompilerParams(
            dimension_semantics=("parallel",),
            vmem_limit_bytes=64 * 1024 * 1024),
    )(x, u, w1p, b1p, w2p, b2p)

    outputs = out[:B, :H2]
    count_spike = jnp.sum(cnt.reshape(num_tiles, 8, 128)[:, 0, 0])
    # TODO(synk): count_add_1 / count_add_2 index the host-side global
    # `core_mem_all` (an empty python list in the reference) per spike; there
    # is no Pallas equivalent, so they are returned as 0.
    count_add_1 = jnp.int32(0)
    count_add_2 = jnp.int32(0)
    return outputs, count_add_1, count_add_2, count_spike


if __name__ == "__main__":
    # small, deterministic setup: batch=2, input 1x28x28 (784), cfg_fc = [128, 16]
    cfg_fc = [128, 16]
    batch_size = 2
    time_window = 20

    key = jax.random.PRNGKey(0)
    k_w1, k_b1, k_w2, k_b2, k_in, k_enc = jax.random.split(key, 6)

    # PyTorch nn.Linear default init: U(-1/sqrt(fan_in), 1/sqrt(fan_in))
    lim1 = 1.0 / (784.0 ** 0.5)
    lim2 = 1.0 / (float(cfg_fc[0]) ** 0.5)
    w1 = jax.random.uniform(k_w1, (784, cfg_fc[0]), jnp.float32, -lim1, lim1)
    b1 = jax.random.uniform(k_b1, (cfg_fc[0],), jnp.float32, -lim1, lim1)
    w2 = jax.random.uniform(k_w2, (cfg_fc[0], cfg_fc[1]), jnp.float32, -lim2, lim2)
    b2 = jax.random.uniform(k_b2, (cfg_fc[1],), jnp.float32, -lim2, lim2)

    # input image intensities in [0, 1) (acts as spike probability)
    x_img = jax.random.uniform(k_in, (batch_size, 1, 28, 28), jnp.float32)

    outputs, c1, c2, c_spike = scnn_forward(x_img, w1, b1, w2, b2,
                                            key=k_enc, time_window=time_window)
    outputs = jax.block_until_ready(outputs)
    c_spike = jax.block_until_ready(c_spike)

    assert outputs.shape == (batch_size, cfg_fc[1])
    assert bool(jnp.all(outputs >= 0.0)) and bool(jnp.all(outputs <= 1.0))
    assert int(c_spike) >= 0
    print("KERNEL_OK")
</pallas_src>

<mosaic_0001>
module attributes {stable_mosaic.version = 11 : i64} {
  func.func @scnn_kernel(%arg0: i32, %arg1: memref<8x784xf32, #tpu.memory_space<vmem>>, %arg2: memref<20x8x784xf32, #tpu.memory_space<vmem>>, %arg3: memref<784x128xbf16, #tpu.memory_space<vmem>>, %arg4: memref<1x128xf32, #tpu.memory_space<vmem>>, %arg5: memref<128x128xbf16, #tpu.memory_space<vmem>>, %arg6: memref<1x128xf32, #tpu.memory_space<vmem>>, %arg7: memref<8x128xf32, #tpu.memory_space<vmem>>, %arg8: memref<8x128xi32, #tpu.memory_space<vmem>>) attributes {dimension_semantics = [#tpu.dimension_semantics<parallel>], iteration_bounds = array<i64: 1>, scalar_prefetch = 0 : i64, scratch_operands = 0 : i64, tpu.core_type = #tpu.core_type<tc>, window_params = [{transform_indices = @transform_0, window_bounds = array<i64: 8, 784>}, {transform_indices = @transform_1, window_bounds = array<i64: 20, 8, 784>}, {pipeline_mode = #tpu.pipeline_mode<synchronous>, transform_indices = @transform_2, window_bounds = array<i64: 784, 128>}, {pipeline_mode = #tpu.pipeline_mode<synchronous>, transform_indices = @transform_3, window_bounds = array<i64: 1, 128>}, {pipeline_mode = #tpu.pipeline_mode<synchronous>, transform_indices = @transform_4, window_bounds = array<i64: 128, 128>}, {pipeline_mode = #tpu.pipeline_mode<synchronous>, transform_indices = @transform_5, window_bounds = array<i64: 1, 128>}, {transform_indices = @transform_6, window_bounds = array<i64: 8, 128>}, {transform_indices = @transform_7, window_bounds = array<i64: 8, 128>}]} {
    %c0 = arith.constant 0 : index
    %c0_0 = arith.constant 0 : index
    %0 = vector.load %arg1[%c0, %c0_0] : memref<8x784xf32, #tpu.memory_space<vmem>>, vector<8x784xf32>
    %c0_1 = arith.constant 0 : index
    %c0_2 = arith.constant 0 : index
    %1 = vector.load %arg3[%c0_1, %c0_2] : memref<784x128xbf16, #tpu.memory_space<vmem>>, vector<784x128xbf16>
    %c0_3 = arith.constant 0 : index
    %c0_4 = arith.constant 0 : index
    %2 = vector.load %arg5[%c0_3, %c0_4] : memref<128x128xbf16, #tpu.memory_space<vmem>>, vector<128x128xbf16>
    %c0_5 = arith.constant 0 : index
    %c0_6 = arith.constant 0 : index
    %3 = vector.load %arg4[%c0_5, %c0_6] : memref<1x128xf32, #tpu.memory_space<vmem>>, vector<1x128xf32>
    %c0_7 = arith.constant 0 : index
    %c0_8 = arith.constant 0 : index
    %4 = vector.load %arg6[%c0_7, %c0_8] : memref<1x128xf32, #tpu.memory_space<vmem>>, vector<1x128xf32>
    %5 = tpu.iota {dimensions = array<i32: 0>} : vector<8x1xi32>
    %c8_i32 = arith.constant 8 : i32
    %6 = arith.muli %arg0, %c8_i32 : i32
    %7 = vector.broadcast %6 : i32 to vector<8x1xi32>
    %8 = arith.addi %5, %7 : vector<8x1xi32>
    %c2_i32 = arith.constant 2 : i32
    %9 = vector.broadcast %c2_i32 : i32 to vector<8x1xi32>
    %10 = arith.cmpi slt, %8, %9 : vector<8x1xi32>
    %11 = arith.extui %10 : vector<8x1xi1> to vector<8x1xi32>
    %12 = arith.sitofp %11 : vector<8x1xi32> to vector<8x1xf32>
    %cst = arith.constant 0.000000e+00 : f32
    %13 = vector.broadcast %cst : f32 to vector<8x128xf32>
    %cst_9 = arith.constant 0.000000e+00 : f32
    %14 = vector.broadcast %cst_9 : f32 to vector<8x128xf32>
    %cst_10 = arith.constant 0.000000e+00 : f32
    %15 = vector.broadcast %cst_10 : f32 to vector<8x128xf32>
    %cst_11 = arith.constant 0.000000e+00 : f32
    %16 = vector.broadcast %cst_11 : f32 to vector<8x128xf32>
    %cst_12 = arith.constant 0.000000e+00 : f32
    %17 = vector.broadcast %cst_12 : f32 to vector<8x128xf32>
    %c0_i32 = arith.constant 0 : i32
    %18 = vector.broadcast %c0_i32 : i32 to vector<1x1xi32>
    %c0_i32_13 = arith.constant 0 : i32
    %c20_i32 = arith.constant 20 : i32
    %19 = arith.addi %c0_i32_13, %c20_i32 : i32
    %c1_i32 = arith.constant 1 : i32
    %20:6 = scf.for %arg9 = %c0_i32_13 to %19 step %c1_i32 iter_args(%arg10 = %13, %arg11 = %14, %arg12 = %15, %arg13 = %16, %arg14 = %17, %arg15 = %18) -> (vector<8x128xf32>, vector<8x128xf32>, vector<8x128xf32>, vector<8x128xf32>, vector<8x128xf32>, vector<1x1xi32>)  : i32 {
      %27 = arith.index_cast %arg9 : i32 to index
      %c0_20 = arith.constant 0 : index
      %c0_21 = arith.constant 0 : index
      %28 = vector.load %arg2[%27, %c0_20, %c0_21] : memref<20x8x784xf32, #tpu.memory_space<vmem>>, vector<1x8x784xf32>
      %29 = vector.shape_cast %28 : vector<1x8x784xf32> to vector<8x784xf32>
      %30 = arith.cmpf ogt, %0, %29 : vector<8x784xf32>
      %31 = arith.extui %30 : vector<8x784xi1> to vector<8x784xi32>
      %32 = arith.sitofp %31 : vector<8x784xi32> to vector<8x784xf32>
      %33 = arith.truncf %32 : vector<8x784xf32> to vector<8x784xbf16>
      %cst_22 = arith.constant dense<0.000000e+00> : vector<8x128xf32>
      %34 = tpu.matmul %33, %1, %cst_22 {dimension_numbers = #tpu.dot_dimension_numbers<[1], [0], [0], [1], [0, 0, 1, 1], [], []>} : vector<8x784xbf16>, vector<784x128xbf16>, vector<8x128xf32> -> vector<8x128xf32>
      %35 = vector.broadcast %3 : vector<1x128xf32> to vector<8x128xf32>
      %36 = arith.addf %34, %35 : vector<8x128xf32>
      %cst_23 = arith.constant 2.000000e-01 : f32
      %37 = vector.broadcast %cst_23 : f32 to vector<8x128xf32>
      %38 = arith.mulf %arg10, %37 : vector<8x128xf32>
      %39 = arith.mulf %38, %arg11 : vector<8x128xf32>
      %40 = arith.subf %38, %39 : vector<8x128xf32>
      %41 = arith.addf %40, %36 : vector<8x128xf32>
      %cst_24 = arith.constant 5.000000e-01 : f32
      %42 = vector.broadcast %cst_24 : f32 to vector<8x128xf32>
      %43 = arith.cmpf ogt, %41, %42 : vector<8x128xf32>
      %44 = arith.extui %43 : vector<8x128xi1> to vector<8x128xi32>
      %45 = arith.sitofp %44 : vector<8x128xi32> to vector<8x128xf32>
      %46 = arith.truncf %45 : vector<8x128xf32> to vector<8x128xbf16>
      %cst_25 = arith.constant dense<0.000000e+00> : vector<8x128xf32>
      %47 = tpu.matmul %46, %2, %cst_25 {dimension_numbers = #tpu.dot_dimension_numbers<[1], [0], [0], [1], [0, 0, 1, 1], [], []>} : vector<8x128xbf16>, vector<128x128xbf16>, vector<8x128xf32> -> vector<8x128xf32>
      %48 = vector.broadcast %4 : vector<1x128xf32> to vector<8x128xf32>
      %49 = arith.addf %47, %48 : vector<8x128xf32>
      %cst_26 = arith.constant 2.000000e-01 : f32
      %50 = vector.broadcast %cst_26 : f32 to vector<8x128xf32>
      %51 = arith.mulf %arg12, %50 : vector<8x128xf32>
      %52 = arith.mulf %51, %arg13 : vector<8x128xf32>
      %53 = arith.subf %51, %52 : vector<8x128xf32>
      %54 = arith.addf %53, %49 : vector<8x128xf32>
      %cst_27 = arith.constant 5.000000e-01 : f32
      %55 = vector.broadcast %cst_27 : f32 to vector<8x128xf32>
      %56 = arith.cmpf ogt, %54, %55 : vector<8x128xf32>
      %57 = arith.extui %56 : vector<8x128xi1> to vector<8x128xi32>
      %58 = arith.sitofp %57 : vector<8x128xi32> to vector<8x128xf32>
      %59 = vector.broadcast %12 : vector<8x1xf32> to vector<8x784xf32>
      %60 = arith.mulf %32, %59 : vector<8x784xf32>
      %61 = vector.shape_cast %60 : vector<8x784xf32> to vector<1x8x784xf32>
      %cst_28 = arith.constant dense<0.000000e+00> : vector<1xf32>
      %62 = vector.multi_reduction <add>, %61, %cst_28 [1, 2] : vector<1x8x784xf32> to vector<1xf32>
      %63 = vector.shape_cast %62 : vector<1xf32> to vector<1x1x1xf32>
      %64 = vector.extract %63[0, 0, 0] : f32 from vector<1x1x1xf32>
      %65 = vector.broadcast %64 : f32 to vector<1x1xf32>
      %66 = vector.broadcast %12 : vector<8x1xf32> to vector<8x128xf32>
      %67 = arith.mulf %45, %66 : vector<8x128xf32>
      %68 = vector.shape_cast %67 : vector<8x128xf32> to vector<1x8x128xf32>
      %cst_29 = arith.constant dense<0.000000e+00> : vector<1xf32>
      %69 = vector.multi_reduction <add>, %68, %cst_29 [1, 2] : vector<1x8x128xf32> to vector<1xf32>
      %70 = vector.shape_cast %69 : vector<1xf32> to vector<1x1x1xf32>
      %71 = vector.extract %70[0, 0, 0] : f32 from vector<1x1x1xf32>
      %72 = vector.broadcast %71 : f32 to vector<1x1xf32>
      %73 = arith.addf %65, %72 : vector<1x1xf32>
      %74 = arith.fptosi %73 : vector<1x1xf32> to vector<1x1xi32>
      %75 = arith.addi %arg15, %74 : vector<1x1xi32>
      %76 = arith.addf %arg14, %58 : vector<8x128xf32>
      scf.yield %41, %45, %54, %58, %76, %75 : vector<8x128xf32>, vector<8x128xf32>, vector<8x128xf32>, vector<8x128xf32>, vector<8x128xf32>, vector<1x1xi32>
    }
    %c20_i32_14 = arith.constant 20 : i32
    %cst_15 = arith.constant 5.000000e-02 : f32
    %21 = vector.broadcast %cst_15 : f32 to vector<8x128xf32>
    %22 = arith.mulf %20#4, %21 : vector<8x128xf32>
    %c0_16 = arith.constant 0 : index
    %c0_17 = arith.constant 0 : index
    %23 = vector.load %arg7[%c0_16, %c0_17] : memref<8x128xf32, #tpu.memory_space<vmem>>, vector<8x128xf32>
    tpu.vector_store %arg7[%c0_16, %c0_17], %22 {strides = array<i32>} : memref<8x128xf32, #tpu.memory_space<vmem>>, vector<8x128xf32>,
    %24 = vector.shape_cast %20#5 : vector<1x1xi32> to vector<1x1xi32>
    %25 = vector.broadcast %24 : vector<1x1xi32> to vector<8x128xi32>
    %c0_18 = arith.constant 0 : index
    %c0_19 = arith.constant 0 : index
    %26 = vector.load %arg8[%c0_18, %c0_19] : memref<8x128xi32, #tpu.memory_space<vmem>>, vector<8x128xi32>
    tpu.vector_store %arg8[%c0_18, %c0_19], %25 {strides = array<i32>} : memref<8x128xi32, #tpu.memory_space<vmem>>, vector<8x128xi32>,
    return
  }
  func.func @transform_0(%arg0: i32) -> (i32, i32) {
    %c0_i32 = arith.constant 0 : i32
    %c0_i32_0 = arith.constant 0 : i32
    return %arg0, %c0_i32 : i32, i32
  }
  func.func @transform_1(%arg0: i32) -> (i32, i32, i32) {
    %c0_i32 = arith.constant 0 : i32
    %c0_i32_0 = arith.constant 0 : i32
    %c0_i32_1 = arith.constant 0 : i32
    return %c0_i32, %arg0, %c0_i32_0 : i32, i32, i32
  }
  func.func @transform_2(%arg0: i32) -> (i32, i32) {
    %c0_i32 = arith.constant 0 : i32
    %c0_i32_0 = arith.constant 0 : i32
    %c0_i32_1 = arith.constant 0 : i32
    return %c0_i32, %c0_i32_0 : i32, i32
  }
  func.func @transform_3(%arg0: i32) -> (i32, i32) {
    %c0_i32 = arith.constant 0 : i32
    %c0_i32_0 = arith.constant 0 : i32
    %c0_i32_1 = arith.constant 0 : i32
    return %c0_i32, %c0_i32_0 : i32, i32
  }
  func.func @transform_4(%arg0: i32) -> (i32, i32) {
    %c0_i32 = arith.constant 0 : i32
    %c0_i32_0 = arith.constant 0 : i32
    %c0_i32_1 = arith.constant 0 : i32
    return %c0_i32, %c0_i32_0 : i32, i32
  }
  func.func @transform_5(%arg0: i32) -> (i32, i32) {
    %c0_i32 = arith.constant 0 : i32
    %c0_i32_0 = arith.constant 0 : i32
    %c0_i32_1 = arith.constant 0 : i32
    return %c0_i32, %c0_i32_0 : i32, i32
  }
  func.func @transform_6(%arg0: i32) -> (i32, i32) {
    %c0_i32 = arith.constant 0 : i32
    %c0_i32_0 = arith.constant 0 : i32
    return %arg0, %c0_i32 : i32, i32
  }
  func.func @transform_7(%arg0: i32) -> (i32, i32) {
    %c0_i32 = arith.constant 0 : i32
    %c0_i32_0 = arith.constant 0 : i32
    return %arg0, %c0_i32 : i32, i32
  }
}

</mosaic_0001>

<bundles_post_ra>
// kernel: tpu_custom_call.1
= control target key start
LH: loop header
LB: loop body
LE: loop exit
PB: predicated region body
PF: predicated region fallthrough
CT: control target
= control target key end

     0   :  { %13 = vsyncpa [#allocation3], 0  ;;  %s2147_s0 = inlined_call_operand.hbm [shape: f32[8,784], index: 0, kind: input, shape index: {}]   ;;  %s2148_s1 = inlined_call_operand.hbm [shape: f32[20,8,784], index: 1, kind: input, shape index: {}]   ;;  %s2149_s2 = inlined_call_operand.hbm [shape: bf16[784,128], index: 2, kind: input, shape index: {}]   ;;  %s2150_s3 = inlined_call_operand.hbm [shape: f32[1,128], index: 3, kind: input, shape index: {}]   ;;  %s2151_s4 = inlined_call_operand.hbm [shape: bf16[128,128], index: 4, kind: input, shape index: {}]   ;;  %s2152_s5 = inlined_call_operand.hbm [shape: f32[1,128], index: 5, kind: input, shape index: {}]   ;;  %s2153_s6 = inlined_call_operand.hbm [shape: f32[8,128], index: 6, kind: output, shape index: {0}]   ;;  %s2154_s7 = inlined_call_operand.hbm [shape: s32[8,128], index: 7, kind: output, shape index: {1}]  }
   0x1   :  { %14 = vsyncpa [#allocation6], 0 }
   0x2   :  { %15 = vsyncpa [#allocation9], 0 }
   0x3   :  { %16 = vsyncpa [#allocation12], 0 }
   0x4   :  { %17 = vsyncpa [#allocation4], 0 }
   0x5   :  { %18 = vsyncpa [#allocation15], 0  ;;  %s1468_s24 = smov [#allocation5]   ;;  %s1224_s28 = scalar_lea.hbm %s2148_s1, 17920 }
   0x6   :  { %s34_s25 = sshll.u32 %s1468_s24, 4  ;;  %p1225_p0 = scmp.ne.s32.totalorder %s2148_s1, %s1224_s28  ;;  %s35_s25 = int_to_ptr.vmem [resolvable:$true] %s34_s25 }
   0x7   :  { %p1228_p1 = scmp.lt.u32.totalorder %s1224_s28, %s2148_s1 }
   0x9   :  { %p1230_p2 = pnand %p1228_p1, %p1225_p0 }
   0xb   :  { %1233 = shalt.err (!%p1230_p2)
}
   0xc   :  { %s1234_s10 = scalar_lea.vmem %s35_s25, 17920  ;;  %p1239_p4 = scmp.lt.s32.totalorder %s35_s25, %s35_s25 }
   0xd   :  { %p1235_p3 = scmp.ne.s32.totalorder %s35_s25, %s1234_s10  ;;  %p1240_p5 = scmp.lt.s32.totalorder %s1234_s10, %s1234_s10 }
   0xf   :  { %p1241_p6 = por %p1240_p5, %p1239_p4 }
  0x11   :  { %p1242_p7 = pnand %p1241_p6, %p1235_p3 }
  0x13   :  { %1245 = shalt.err (!%p1242_p7)
}
  0x14   :  { %s1469_s11 = smov 896   ;;  %s1470_s12 = smov 56  }
  0x15   :  { %40 = dma.hbm_to_vmem [thread:$0]  %s2148_s1, 17920, %s35_s25, [#allocation6], %s1469_s11, %s1469_s11, %s1470_s12  }
  0x16   :  { %s1471_s15 = smov [#allocation8]   ;;  %s1472_s17 = smov [#allocation2]  }
  0x17   :  { %s59_s16 = sshll.u32 %s1471_s15, 4  ;;  %s25_s18 = sshll.u32 %s1472_s17, 4  ;;  %s60_s16 = int_to_ptr.vmem [resolvable:$true] %s59_s16  ;;  %s26_s18 = int_to_ptr.vmem [resolvable:$true] %s25_s18 }
  0x18   :  { %s1246_s21 = scalar_lea.hbm %s2150_s3, 16 }
  0x19   :  { %p1247_p8 = scmp.ne.s32.totalorder %s2150_s3, %s1246_s21  ;;  %p1250_p9 = scmp.lt.u32.totalorder %s1246_s21, %s2150_s3 }
  0x1b   :  { %p1252_p10 = pnand %p1250_p9, %p1247_p8 }
  0x1d   :  { %1255 = shalt.err (!%p1252_p10)
}
  0x1e   :  { %s1256_s1 = scalar_lea.vmem %s60_s16, 16  ;;  %s1260_s25 = scalar_lea.vmem %s60_s16, 32 }
  0x1f   :  { %p1257_p11 = scmp.ne.s32.totalorder %s60_s16, %s1256_s1  ;;  %p1261_p12 = scmp.lt.s32.totalorder %s60_s16, %s60_s16 }
  0x20   :  { %p1262_p13 = scmp.lt.s32.totalorder %s1260_s25, %s1256_s1 }
  0x22   :  { %p1263_p0 = por %p1262_p13, %p1261_p12 }
  0x24   :  { %p1264_p1 = pnand %p1263_p0, %p1257_p11 }
  0x26   :  { %1267 = shalt.err (!%p1264_p1)
}
  0x27   :  { %62 = dma.hbm_to_vmem [thread:$0]  %s2150_s3, 16, %s60_s16, [#allocation9]  }
  0x28   :  { %s1268_s8 = scalar_lea.hbm %s2147_s0, 896 }
  0x29   :  { %p1269_p2 = scmp.ne.s32.totalorder %s2147_s0, %s1268_s8  ;;  %p1272_p3 = scmp.lt.u32.totalorder %s1268_s8, %s2147_s0 }
  0x2b   :  { %p1274_p4 = pnand %p1272_p3, %p1269_p2 }
  0x2d   :  { %1277 = shalt.err (!%p1274_p4)
}
  0x2e   :  { %s1278_s13 = scalar_lea.vmem %s26_s18, 896  ;;  %p1283_p6 = scmp.lt.s32.totalorder %s26_s18, %s26_s18 }
  0x2f   :  { %p1279_p5 = scmp.ne.s32.totalorder %s26_s18, %s1278_s13  ;;  %p1284_p7 = scmp.lt.s32.totalorder %s1278_s13, %s1278_s13 }
  0x31   :  { %p1285_p8 = por %p1284_p7, %p1283_p6 }
  0x33   :  { %p1286_p9 = pnand %p1285_p8, %p1279_p5 }
  0x35   :  { %1289 = shalt.err (!%p1286_p9)
}
  0x36   :  { %28 = dma.hbm_to_vmem [thread:$0]  %s2147_s0, 896, %s26_s18, [#allocation3]  }
  0x37   :  { %s1473_s15 = smov [#allocation7]   ;;  %s1290_s20 = scalar_lea.hbm %s2149_s2, 6272 }
  0x38   :  { %s46_s16 = sshll.u32 %s1473_s15, 4  ;;  %p1291_p10 = scmp.ne.s32.totalorder %s2149_s2, %s1290_s20  ;;  %s47_s16 = int_to_ptr.vmem [resolvable:$true] %s46_s16 }
  0x39   :  { %p1294_p11 = scmp.lt.u32.totalorder %s1290_s20, %s2149_s2 }
  0x3b   :  { %p1296_p12 = pnand %p1294_p11, %p1291_p10 }
  0x3d   :  { %1299 = shalt.err (!%p1296_p12)
}
  0x3e   :  { %s1300_s26 = scalar_lea.vmem %s47_s16, 6272  ;;  %p1305_p0 = scmp.lt.s32.totalorder %s47_s16, %s47_s16 }
  0x3f   :  { %p1301_p13 = scmp.ne.s32.totalorder %s47_s16, %s1300_s26  ;;  %p1306_p1 = scmp.lt.s32.totalorder %s1300_s26, %s1300_s26 }
  0x41   :  { %p1307_p2 = por %p1306_p1, %p1305_p0 }
  0x43   :  { %p1308_p3 = pnand %p1307_p2, %p1301_p13 }
  0x45   :  { %1311 = shalt.err (!%p1308_p3)
}
  0x46   :  { %s1474_s0 = smov 64   ;;  %s1475_s18 = smov 4  }
  0x47   :  { %52 = dma.hbm_to_vmem [thread:$0]  %s2149_s2, 6272, %s47_s16, [#allocation6], %s1474_s0, %s1474_s0, %s1475_s18  }
  0x48   :  { %s1476_s27 = smov [#allocation10]   ;;  %s1477_s29 = smov [#allocation11]  }
  0x49   :  { %s68_s28 = sshll.u32 %s1476_s27, 4  ;;  %s81_s30 = sshll.u32 %s1477_s29, 4  ;;  %s69_s28 = int_to_ptr.vmem [resolvable:$true] %s68_s28  ;;  %s82_s30 = int_to_ptr.vmem [resolvable:$true] %s81_s30 }
  0x4a   :  { %s1312_s10 = scalar_lea.hbm %s2151_s4, 1024 }
  0x4b   :  { %p1313_p4 = scmp.ne.s32.totalorder %s2151_s4, %s1312_s10  ;;  %p1316_p5 = scmp.lt.u32.totalorder %s1312_s10, %s2151_s4 }
  0x4d   :  { %p1318_p6 = pnand %p1316_p5, %p1313_p4 }
  0x4f   :  { %1321 = shalt.err (!%p1318_p6)
}
  0x50   :  { %s1322_s2 = scalar_lea.vmem %s69_s28, 1024  ;;  %p1327_p8 = scmp.lt.s32.totalorder %s69_s28, %s69_s28 }
  0x51   :  { %p1323_p7 = scmp.ne.s32.totalorder %s69_s28, %s1322_s2  ;;  %p1328_p9 = scmp.lt.s32.totalorder %s1322_s2, %s1322_s2 }
  0x53   :  { %p1329_p10 = por %p1328_p9, %p1327_p8 }
  0x55   :  { %p1330_p11 = pnand %p1329_p10, %p1323_p7 }
  0x57   :  { %1333 = shalt.err (!%p1330_p11)
}
  0x58   :  { %74 = dma.hbm_to_vmem [thread:$0]  %s2151_s4, 1024, %s69_s28, [#allocation9], %s1474_s0, %s1474_s0, %s1475_s18  }
  0x59   :  { %s1334_s19 = scalar_lea.hbm %s2152_s5, 16 }
  0x5a   :  { %p1335_p12 = scmp.ne.s32.totalorder %s2152_s5, %s1334_s19  ;;  %p1338_p13 = scmp.lt.u32.totalorder %s1334_s19, %s2152_s5 }
  0x5c   :  { %p1340_p0 = pnand %p1338_p13, %p1335_p12 }
  0x5e   :  { %1343 = shalt.err (!%p1340_p0)
}
  0x5f   :  { %s1344_s24 = scalar_lea.vmem %s82_s30, 16  ;;  %s1348_s26 = scalar_lea.vmem %s82_s30, 32 }
  0x60   :  { %p1345_p1 = scmp.ne.s32.totalorder %s82_s30, %s1344_s24  ;;  %p1349_p2 = scmp.lt.s32.totalorder %s82_s30, %s82_s30 }
  0x61   :  { %p1350_p3 = scmp.lt.s32.totalorder %s1348_s26, %s1344_s24 }
  0x63   :  { %p1351_p4 = por %p1350_p3, %p1349_p2 }
  0x65   :  { %p1352_p5 = pnand %p1351_p4, %p1345_p1 }
  0x67   :  { %1355 = shalt.err (!%p1352_p5)
}
  0x68   :  { %84 = dma.hbm_to_vmem [thread:$0]  %s2152_s5, 16, %s82_s30, [#allocation12]  }
  0x69   :  { %1428 = dma.done.wait [#allocation3], 896  }
  0x6a   :  { %1429 = vsyncadd [#allocation3], 4294966400 }
  0x6b   :  { %1430 = dma.done.wait [#allocation6], 24192  }
  0x6c   :  { %1431 = vsyncadd [#allocation6], 4294943104 }
  0x6d   :  { %1432 = dma.done.wait [#allocation9], 1040  }
  0x6e   :  { %1433 = vsyncadd [#allocation9], 4294966256 }
  0x6f   :  { %1434 = dma.done.wait [#allocation12], 16  }
  0x70   :  { %1435 = vsyncadd [#allocation12], 4294967280  ;;  %v227_v0 = vlaneseq  ;;  %v1478_v2 = vmov 0.0   ;;  %v1598_v4 = vld [vmem:[#allocation2] sm:$0xff]  ;;  %v1600_v5 = vld [vmem:[#allocation2 + $0x8] sm:$0xff]  ;;  %s1856_s5 = smov 0  }
  0x71   :  { %2162 = vst [vmem:[#allocation22_spill] sm:$0xff] %v1598_v4  ;;  %2163 = vst [vmem:[#allocation23_spill] sm:$0xff] %v1600_v5  ;;  %v1602_v6 = vld [vmem:[#allocation2 + $0x10] sm:$0xff]  ;;  %v1604_v7 = vld [vmem:[#allocation2 + $0x18] sm:$0xff] }
  0x72   :  { %v228_v1 = vshrl.u32 %v227_v0, 7  ;;  %v1606_v8 = vld [vmem:[#allocation2 + $0x20] sm:$0xff]  ;;  %v1608_v9 = vld [vmem:[#allocation2 + $0x28] sm:$0xff]  ;;  %v1610_v10 = vld [vmem:[#allocation2 + $0x30] sm:$0xff] }
  0x73   :  { %2164 = vst [vmem:[#allocation24_spill] sm:$0xff] %v1606_v8  ;;  %2165 = vst [vmem:[#allocation25_spill] sm:$0xff] %v1608_v9  ;;  %v1612_v11 = vld [vmem:[#allocation7] sm:$0xf]  ;;  %v1614_v12 = vld [vmem:[#allocation7 + $0x4] sm:$0xf] }
  0x74   :  { %vm232_vm0 = vcmp.lt.s32.totalorder %v228_v1, 2  ;;  %2166 = vst [vmem:[#allocation26_spill] sm:$0xff] %v1610_v10  ;;  %2167 = vst [vmem:[#allocation27_spill] sm:$0xff] %v1612_v11  ;;  %v1616_v13 = vld [vmem:[#allocation7 + $0x8] sm:$0xf] }
  0x75   :  { %v1596_v3 = vsel %vm232_vm0, 1.0, %v1478_v2  ;;  %2168 = vst [vmem:[#allocation28_spill] sm:$0xff] %v1614_v12  ;;  %2169 = vst [vmem:[#allocation29_spill] sm:$0xff] %v1616_v13  ;;  %v1618_v14 = vld [vmem:[#allocation7 + $0xc] sm:$0xf] }
  0x76   :  { %2170 = vst [vmem:[#allocation30_spill] sm:$0xff] %v1618_v14  ;;  %v1620_v15 = vld [vmem:[#allocation7 + $0x10] sm:$0xf]  ;;  %v1622_v16 = vld [vmem:[#allocation7 + $0x14] sm:$0xf] }
  0x77   :  { %2171 = vst [vmem:[#allocation31_spill] sm:$0xff] %v1620_v15  ;;  %2172 = vst [vmem:[#allocation32_spill] sm:$0xff] %v1622_v16  ;;  %v1624_v17 = vld [vmem:[#allocation7 + $0x18] sm:$0xf]  ;;  %v1626_v18 = vld [vmem:[#allocation7 + $0x1c] sm:$0xf] }
  0x78   :  { %2173 = vst [vmem:[#allocation33_spill] sm:$0xff] %v1624_v17  ;;  %2174 = vst [vmem:[#allocation34_spill] sm:$0xff] %v1626_v18  ;;  %v1628_v19 = vld [vmem:[#allocation7 + $0x20] sm:$0xf]  ;;  %v1630_v20 = vld [vmem:[#allocation7 + $0x24] sm:$0xf] }
  0x79   :  { %2175 = vst [vmem:[#allocation35_spill] sm:$0xff] %v1628_v19  ;;  %2176 = vst [vmem:[#allocation36_spill] sm:$0xff] %v1630_v20  ;;  %v1632_v21 = vld [vmem:[#allocation7 + $0x28] sm:$0xf]  ;;  %v1634_v22 = vld [vmem:[#allocation7 + $0x2c] sm:$0xf] }
  0x7a   :  { %v1636_v23 = vld [vmem:[#allocation7 + $0x30] sm:$0xf]  ;;  %v1638_v24 = vld [vmem:[#allocation7 + $0x34] sm:$0xf]  ;;  %v1640_v25 = vld [vmem:[#allocation7 + $0x38] sm:$0xf] }
  0x7b   :  { %2177 = vst [vmem:[#allocation37_spill] sm:$0xff] %v1636_v23  ;;  %2178 = vst [vmem:[#allocation38_spill] sm:$0xff] %v1638_v24  ;;  %v1642_v26 = vld [vmem:[#allocation7 + $0x3c] sm:$0xf]  ;;  %v1644_v27 = vld [vmem:[#allocation7 + $0x40] sm:$0xf] }
  0x7c   :  { %2179 = vst [vmem:[#allocation39_spill] sm:$0xff] %v1640_v25  ;;  %2180 = vst [vmem:[#allocation40_spill] sm:$0xff] %v1642_v26  ;;  %v1646_v28 = vld [vmem:[#allocation7 + $0x44] sm:$0xf]  ;;  %v1648_v29 = vld [vmem:[#allocation7 + $0x48] sm:$0xf] }
  0x7d   :  { %2181 = vst [vmem:[#allocation41_spill] sm:$0xff] %v1644_v27  ;;  %2182 = vst [vmem:[#allocation42_spill] sm:$0xff] %v1646_v28  ;;  %v1650_v30 = vld [vmem:[#allocation7 + $0x4c] sm:$0xf]  ;;  %v1652_v31 = vld [vmem:[#allocation7 + $0x50] sm:$0xf] }
  0x7e   :  { %v1654_v32 = vld [vmem:[#allocation7 + $0x54] sm:$0xf]  ;;  %v1656_v33 = vld [vmem:[#allocation7 + $0x58] sm:$0xf]  ;;  %v1658_v34 = vld [vmem:[#allocation7 + $0x5c] sm:$0xf] }
  0x7f   :  { %v1660_v35 = vld [vmem:[#allocation7 + $0x60] sm:$0xf]  ;;  %v1662_v36 = vld [vmem:[#allocation7 + $0x64] sm:$0xf]  ;;  %v1664_v37 = vld [vmem:[#allocation7 + $0x68] sm:$0xf] }
  0x80   :  { %v1666_v38 = vld [vmem:[#allocation7 + $0x6c] sm:$0xf]  ;;  %v1668_v39 = vld [vmem:[#allocation7 + $0x70] sm:$0xf]  ;;  %v1670_v40 = vld [vmem:[#allocation7 + $0x74] sm:$0xf] }
  0x81   :  { %2183 = vst [vmem:[#allocation43_spill] sm:$0xff] %v1668_v39  ;;  %2184 = vst [vmem:[#allocation44_spill] sm:$0xff] %v1670_v40  ;;  %v1672_v41 = vld [vmem:[#allocation7 + $0x78] sm:$0xf]  ;;  %v1674_v42 = vld [vmem:[#allocation7 + $0x7c] sm:$0xf] }
  0x82   :  { %2185 = vst [vmem:[#allocation45_spill] sm:$0xff] %v1672_v41  ;;  %2186 = vst [vmem:[#allocation46_spill] sm:$0xff] %v1674_v42  ;;  %v1676_v43 = vld [vmem:[#allocation7 + $0x80] sm:$0xf]  ;;  %v1678_v44 = vld [vmem:[#allocation7 + $0x84] sm:$0xf] }
  0x83   :  { %v1680_v45 = vld [vmem:[#allocation7 + $0x88] sm:$0xf]  ;;  %v1682_v46 = vld [vmem:[#allocation7 + $0x8c] sm:$0xf]  ;;  %v1684_v47 = vld [vmem:[#allocation7 + $0x90] sm:$0xf] }
  0x84   :  { %v1686_v48 = vld [vmem:[#allocation7 + $0x94] sm:$0xf]  ;;  %v1688_v49 = vld [vmem:[#allocation7 + $0x98] sm:$0xf]  ;;  %v1690_v50 = vld [vmem:[#allocation7 + $0x9c] sm:$0xf] }
  0x85   :  { %v1692_v51 = vld [vmem:[#allocation7 + $0xa0] sm:$0xf]  ;;  %v1694_v52 = vld [vmem:[#allocation7 + $0xa4] sm:$0xf]  ;;  %v1696_v53 = vld [vmem:[#allocation7 + $0xa8] sm:$0xf] }
  0x86   :  { %v1698_v54 = vld [vmem:[#allocation7 + $0xac] sm:$0xf]  ;;  %v1700_v55 = vld [vmem:[#allocation7 + $0xb0] sm:$0xf]  ;;  %v1702_v56 = vld [vmem:[#allocation7 + $0xb4] sm:$0xf] }
  0x87   :  { %2187 = vst [vmem:[#allocation47_spill] sm:$0xff] %v1700_v55  ;;  %2188 = vst [vmem:[#allocation48_spill] sm:$0xff] %v1702_v56  ;;  %v1704_v57 = vld [vmem:[#allocation7 + $0xb8] sm:$0xf]  ;;  %v1706_v58 = vld [vmem:[#allocation7 + $0xbc] sm:$0xf] }
  0x88   :  { %2189 = vst [vmem:[#allocation49_spill] sm:$0xff] %v1704_v57  ;;  %2190 = vst [vmem:[#allocation50_spill] sm:$0xff] %v1706_v58  ;;  %v1708_v59 = vld [vmem:[#allocation7 + $0xc0] sm:$0xf]  ;;  %v1710_v60 = vld [vmem:[#allocation7 + $0xc4] sm:$0xf] }
  0x89   :  { %v1712_v61 = vld [vmem:[#allocation7 + $0xc8] sm:$0xf]  ;;  %v1714_v62 = vld [vmem:[#allocation7 + $0xcc] sm:$0xf]  ;;  %v1716_v63 = vld [vmem:[#allocation7 + $0xd0] sm:$0xf] }
  0x8a   :  { %v1718_v0 = vld [vmem:[#allocation7 + $0xd4] sm:$0xf]  ;;  %v1720_v1 = vld [vmem:[#allocation7 + $0xd8] sm:$0xf]  ;;  %v1722_v2 = vld [vmem:[#allocation7 + $0xdc] sm:$0xf] }
  0x8b   :  { %2191 = vst [vmem:[#allocation51_spill] sm:$0xff] %v1718_v0  ;;  %2192 = vst [vmem:[#allocation52_spill] sm:$0xff] %v1720_v1  ;;  %v1724_v8 = vld [vmem:[#allocation7 + $0xe0] sm:$0xf]  ;;  %v1726_v10 = vld [vmem:[#allocation7 + $0xe4] sm:$0xf] }
  0x8c   :  { %2193 = vst [vmem:[#allocation53_spill] sm:$0xff] %v1722_v2  ;;  %2194 = vst [vmem:[#allocation54_spill] sm:$0xff] %v1724_v8  ;;  %v1728_v9 = vld [vmem:[#allocation7 + $0xe8] sm:$0xf]  ;;  %v1730_v57 = vld [vmem:[#allocation7 + $0xec] sm:$0xf] }
  0x8d   :  { %2195 = vst [vmem:[#allocation55_spill] sm:$0xff] %v1726_v10  ;;  %2196 = vst [vmem:[#allocation56_spill] sm:$0xff] %v1728_v9  ;;  %v1732_v58 = vld [vmem:[#allocation7 + $0xf0] sm:$0xf]  ;;  %v1734_v25 = vld [vmem:[#allocation7 + $0xf4] sm:$0xf] }
  0x8e   :  { %2197 = vst [vmem:[#allocation57_spill] sm:$0xff] %v1732_v58  ;;  %2198 = vst [vmem:[#allocation58_spill] sm:$0xff] %v1734_v25  ;;  %v1736_v26 = vld [vmem:[#allocation7 + $0xf8] sm:$0xf]  ;;  %v1738_v41 = vld [vmem:[#allocation7 + $0xfc] sm:$0xf] }
  0x8f   :  { %2199 = vst [vmem:[#allocation59_spill] sm:$0xff] %v1736_v26  ;;  %2200 = vst [vmem:[#allocation60_spill] sm:$0xff] %v1738_v41  ;;  %v1740_v42 = vld [vmem:[#allocation7 + $0x100] sm:$0xf]  ;;  %v1742_v55 = vld [vmem:[#allocation7 + $0x104] sm:$0xf] }
  0x90   :  { %2201 = vst [vmem:[#allocation61_spill] sm:$0xff] %v1740_v42  ;;  %2202 = vst [vmem:[#allocation62_spill] sm:$0xff] %v1742_v55  ;;  %v1744_v56 = vld [vmem:[#allocation7 + $0x108] sm:$0xf]  ;;  %v1746_v23 = vld [vmem:[#allocation7 + $0x10c] sm:$0xf] }
  0x91   :  { %2203 = vst [vmem:[#allocation63_spill] sm:$0xff] %v1744_v56  ;;  %2204 = vst [vmem:[#allocation64_spill] sm:$0xff] %v1746_v23  ;;  %v1748_v24 = vld [vmem:[#allocation7 + $0x110] sm:$0xf]  ;;  %v1750_v39 = vld [vmem:[#allocation7 + $0x114] sm:$0xf] }
  0x92   :  { %2205 = vst [vmem:[#allocation65_spill] sm:$0xff] %v1748_v24  ;;  %2206 = vst [vmem:[#allocation66_spill] sm:$0xff] %v1750_v39  ;;  %v1752_v40 = vld [vmem:[#allocation7 + $0x118] sm:$0xf]  ;;  %v1754_v58 = vld [vmem:[#allocation7 + $0x11c] sm:$0xf] }
  0x93   :  { %2207 = vst [vmem:[#allocation67_spill] sm:$0xff] %v1752_v40  ;;  %2208 = vst [vmem:[#allocation68_spill] sm:$0xff] %v1754_v58  ;;  %v1756_v25 = vld [vmem:[#allocation7 + $0x120] sm:$0xf]  ;;  %v1758_v26 = vld [vmem:[#allocation7 + $0x124] sm:$0xf] }
  0x94   :  { %2209 = vst [vmem:[#allocation69_spill] sm:$0xff] %v1756_v25  ;;  %2210 = vst [vmem:[#allocation70_spill] sm:$0xff] %v1758_v26  ;;  %v1760_v41 = vld [vmem:[#allocation7 + $0x128] sm:$0xf]  ;;  %v1762_v42 = vld [vmem:[#allocation7 + $0x12c] sm:$0xf] }
  0x95   :  { %2211 = vst [vmem:[#allocation71_spill] sm:$0xff] %v1760_v41  ;;  %2212 = vst [vmem:[#allocation72_spill] sm:$0xff] %v1762_v42  ;;  %v1764_v55 = vld [vmem:[#allocation7 + $0x130] sm:$0xf]  ;;  %v1766_v56 = vld [vmem:[#allocation7 + $0x134] sm:$0xf] }
  0x96   :  { %2213 = vst [vmem:[#allocation73_spill] sm:$0xff] %v1764_v55  ;;  %2214 = vst [vmem:[#allocation74_spill] sm:$0xff] %v1766_v56  ;;  %v1768_v23 = vld [vmem:[#allocation7 + $0x138] sm:$0xf]  ;;  %v1770_v24 = vld [vmem:[#allocation7 + $0x13c] sm:$0xf] }
  0x97   :  { %2215 = vst [vmem:[#allocation75_spill] sm:$0xff] %v1768_v23  ;;  %2216 = vst [vmem:[#allocation76_spill] sm:$0xff] %v1770_v24  ;;  %v1772_v39 = vld [vmem:[#allocation7 + $0x140] sm:$0xf]  ;;  %v1774_v40 = vld [vmem:[#allocation7 + $0x144] sm:$0xf] }
  0x98   :  { %2217 = vst [vmem:[#allocation77_spill] sm:$0xff] %v1772_v39  ;;  %2218 = vst [vmem:[#allocation78_spill] sm:$0xff] %v1774_v40  ;;  %v1776_v58 = vld [vmem:[#allocation7 + $0x148] sm:$0xf]  ;;  %v1778_v25 = vld [vmem:[#allocation7 + $0x14c] sm:$0xf] }
  0x99   :  { %2219 = vst [vmem:[#allocation79_spill] sm:$0xff] %v1776_v58  ;;  %2220 = vst [vmem:[#allocation80_spill] sm:$0xff] %v1778_v25  ;;  %v1780_v26 = vld [vmem:[#allocation7 + $0x150] sm:$0xf]  ;;  %v1782_v41 = vld [vmem:[#allocation7 + $0x154] sm:$0xf] }
  0x9a   :  { %2221 = vst [vmem:[#allocation81_spill] sm:$0xff] %v1780_v26  ;;  %2222 = vst [vmem:[#allocation82_spill] sm:$0xff] %v1782_v41  ;;  %v1784_v42 = vld [vmem:[#allocation7 + $0x158] sm:$0xf]  ;;  %v1786_v55 = vld [vmem:[#allocation7 + $0x15c] sm:$0xf] }
  0x9b   :  { %2223 = vst [vmem:[#allocation83_spill] sm:$0xff] %v1784_v42  ;;  %2224 = vst [vmem:[#allocation84_spill] sm:$0xff] %v1786_v55  ;;  %v1788_v56 = vld [vmem:[#allocation7 + $0x160] sm:$0xf]  ;;  %v1790_v23 = vld [vmem:[#allocation7 + $0x164] sm:$0xf] }
  0x9c   :  { %2225 = vst [vmem:[#allocation85_spill] sm:$0xff] %v1788_v56  ;;  %2226 = vst [vmem:[#allocation86_spill] sm:$0xff] %v1790_v23  ;;  %v1792_v24 = vld [vmem:[#allocation7 + $0x168] sm:$0xf]  ;;  %v1794_v39 = vld [vmem:[#allocation7 + $0x16c] sm:$0xf] }
  0x9d   :  { %2227 = vst [vmem:[#allocation87_spill] sm:$0xff] %v1792_v24  ;;  %2228 = vst [vmem:[#allocation88_spill] sm:$0xff] %v1794_v39  ;;  %v1796_v40 = vld [vmem:[#allocation7 + $0x170] sm:$0xf]  ;;  %v1798_v58 = vld [vmem:[#allocation7 + $0x174] sm:$0xf] }
  0x9e   :  { %2229 = vst [vmem:[#allocation89_spill] sm:$0xff] %v1796_v40  ;;  %2230 = vst [vmem:[#allocation90_spill] sm:$0xff] %v1798_v58  ;;  %v1800_v25 = vld [vmem:[#allocation7 + $0x178] sm:$0xf]  ;;  %v1802_v26 = vld [vmem:[#allocation7 + $0x17c] sm:$0xf] }
  0x9f   :  { %2231 = vst [vmem:[#allocation91_spill] sm:$0xff] %v1800_v25  ;;  %2232 = vst [vmem:[#allocation92_spill] sm:$0xff] %v1802_v26  ;;  %v1804_v41 = vld [vmem:[#allocation7 + $0x180] sm:$0xf]  ;;  %v1806_v42 = vld [vmem:[#allocation7 + $0x184] sm:$0xf] }
  0xa0   :  { %2233 = vst [vmem:[#allocation93_spill] sm:$0xff] %v1804_v41  ;;  %2234 = vst [vmem:[#allocation94_spill] sm:$0xff] %v1806_v42  ;;  %v1808_v55 = vld [vmem:[#allocation10] sm:$0xf]  ;;  %v1810_v56 = vld [vmem:[#allocation10 + $0x4] sm:$0xf] }
  0xa1   :  { %2235 = vst [vmem:[#allocation95_spill] sm:$0xff] %v1808_v55  ;;  %2236 = vst [vmem:[#allocation96_spill] sm:$0xff] %v1810_v56  ;;  %v1812_v23 = vld [vmem:[#allocation10 + $0x8] sm:$0xf]  ;;  %v1814_v24 = vld [vmem:[#allocation10 + $0xc] sm:$0xf] }
  0xa2   :  { %2237 = vst [vmem:[#allocation97_spill] sm:$0xff] %v1812_v23  ;;  %2238 = vst [vmem:[#allocation98_spill] sm:$0xff] %v1814_v24  ;;  %v1816_v39 = vld [vmem:[#allocation10 + $0x10] sm:$0xf]  ;;  %v1818_v40 = vld [vmem:[#allocation10 + $0x14] sm:$0xf] }
  0xa3   :  { %2239 = vst [vmem:[#allocation99_spill] sm:$0xff] %v1816_v39  ;;  %2240 = vst [vmem:[#allocation100_spill] sm:$0xff] %v1818_v40  ;;  %v1820_v58 = vld [vmem:[#allocation10 + $0x18] sm:$0xf]  ;;  %v1822_v25 = vld [vmem:[#allocation10 + $0x1c] sm:$0xf] }
  0xa4   :  { %2241 = vst [vmem:[#allocation101_spill] sm:$0xff] %v1820_v58  ;;  %2242 = vst [vmem:[#allocation102_spill] sm:$0xff] %v1822_v25  ;;  %v1824_v26 = vld [vmem:[#allocation10 + $0x20] sm:$0xf]  ;;  %v1826_v41 = vld [vmem:[#allocation10 + $0x24] sm:$0xf] }
  0xa5   :  { %2243 = vst [vmem:[#allocation103_spill] sm:$0xff] %v1824_v26  ;;  %2244 = vst [vmem:[#allocation104_spill] sm:$0xff] %v1826_v41  ;;  %v1828_v42 = vld [vmem:[#allocation10 + $0x28] sm:$0xf]  ;;  %v1830_v55 = vld [vmem:[#allocation10 + $0x2c] sm:$0xf] }
  0xa6   :  { %2245 = vst [vmem:[#allocation105_spill] sm:$0xff] %v1828_v42  ;;  %2246 = vst [vmem:[#allocation106_spill] sm:$0xff] %v1830_v55  ;;  %v1832_v56 = vld [vmem:[#allocation10 + $0x30] sm:$0xf]  ;;  %v1834_v23 = vld [vmem:[#allocation10 + $0x34] sm:$0xf] }
  0xa7   :  { %2247 = vst [vmem:[#allocation107_spill] sm:$0xff] %v1832_v56  ;;  %v1836_v24 = vld [vmem:[#allocation10 + $0x38] sm:$0xf]  ;;  %v1838_v39 = vld [vmem:[#allocation10 + $0x3c] sm:$0xf]  ;;  %v1844_v25 = vmov 0  }
  0xa8   :  { %v1840_v40 = vld [vmem:[#allocation8] ss:$0 sm:$0xff]  ;;  %v1842_v58 = vld [vmem:[#allocation11] ss:$0 sm:$0xff]  ;;  %v1846_v26 = vmov 0.0   ;;  %v1848_v41 = vmov 0.0  }
  0xa9   :  { %2248 = vst [vmem:[#allocation108_spill] sm:$0xff] %v1842_v58  ;;  %v1850_v42 = vmov 0.0   ;;  %v1852_v55 = vmov 0.0   ;;  %v1854_v56 = vmov 0.0  }
  0xaa LB: > { %v2249_v4 = vld [vmem:[#allocation22_spill] sm:$0xff]  ;;  %2250 = vst [vmem:[#allocation109_spill] sm:$0xff] %v1442_v25  ;;  %2251 = vst [vmem:[#allocation110_spill] sm:$0xff] %v1446_v26  ;;  %v2256_v27 = vld [vmem:[#allocation41_spill] sm:$0xff]  ;;  %v991_v58 = vcombine.low %v1708_v59, %v1710_v60  ;;  %s1042_s18 = smul.u32 56, %s1466_s5  ;;  %vm1481_vm12 = vmmov 0   ;;  %v1442_v25 = vphi %v1844_v25, %v2348_v25   ;;  %s1466_s5 = sphi %s1856_s5, %s240_s5   ;;  %v1462_v56 = vphi %v1854_v56, %v752_v56   ;;  %v1458_v55 = vphi %v1852_v55, %v1029_v55   ;;  %v1454_v42 = vphi %v1850_v42, %v854_v42   ;;  %v1450_v41 = vphi %v1848_v41, %v1041_v41   ;;  %v1446_v26 = vphi %v1846_v26, %v2349_v26  }
  0xab   : > { %2252 = vst [vmem:[#allocation111_spill] sm:$0xff] %v1450_v41  ;;  %2253 = vst [vmem:[#allocation112_spill] sm:$0xff] %v1454_v42  ;;  %v2255_v28 = vld [vmem:[#allocation42_spill] sm:$0xff]  ;;  %v2257_v12 = vld [vmem:[#allocation28_spill] sm:$0xff]  ;;  %v983_v41 = vcombine.low %v1676_v43, %v1678_v44  ;;  %v976_v42 = vcombine.low %v1648_v29, %v1650_v30  ;;  %vm585_vm13 = vcmask 130048   ;;  %s240_s5 = sadd.s32 1, %s1466_s5  }
  0xac   : > { %2254 = vst [vmem:[#allocation113_spill] sm:$0xff] %v1458_v55  ;;  %v975_v25 = vcombine.low %v2256_v27, %v2255_v28  ;;  %v2258_v11 = vld [vmem:[#allocation27_spill] sm:$0xff]  ;;  %v992_v55 = vcombine.low %v1712_v61, %v1714_v62  ;;  %1065 = vmatprep.subr.bf16.mxu1 %v991_v58  ;;  %v2259_v14 = vld [vmem:[#allocation30_spill] sm:$0xff]  ;;  %v2260_v13 = vld [vmem:[#allocation29_spill] sm:$0xff]  ;;  %v977_v27 = vcombine.low %v1652_v31, %v1654_v32  ;;  %s1900_s1 = scalar_lea.vmem [#allocation5], %s1042_s18  ;;  %p237_p6 = scmp.ge.s32.totalorder %s240_s5, 20  }
  0xad   : > { %v967_v26 = vcombine.low %v2258_v11, %v2257_v12  ;;  %1066 = vmatpush3.bf16.msra.mxu1 %v983_v41  ;;  %v968_v11 = vcombine.low %v2260_v13, %v2259_v14  ;;  %v984_v12 = vcombine.low %v1680_v45, %v1682_v46  ;;  %v2261_v0 = vld [vmem:[#allocation51_spill] sm:$0xff]  ;;  %v2262_v16 = vld [vmem:[#allocation32_spill] sm:$0xff]  ;;  %v978_v58 = vcombine.low %v1656_v33, %v1658_v34  ;;  %v2264_v2 = vld [vmem:[#allocation53_spill] sm:$0xff]  ;;  %s1482_s28 = smov (%p237_p6), [#allocation13]   ;;  %s1483_s30 = smov (%p237_p6), [#allocation14]  }
  0xae   : > { %1043 = vmatprep.subr.bf16.mxu0 %v975_v25  ;;  %1067 = vmatprep.subr.bf16.mxu1 %v992_v55  ;;  %v993_v28 = vcombine.low %v1716_v63, %v2261_v0  ;;  %v251_v25 = vld [vmem:[%s1900_s1 + $0x8] sm:$0xff]  ;;  %v2263_v15 = vld [vmem:[#allocation31_spill] sm:$0xff]  ;;  %v1918_v13 = vld [vmem:[%s1900_s1 + $0x10] sm:$0xff]  ;;  %v980_v14 = vcombine.low %v1664_v37, %v1666_v38  ;;  %s906_s29 = sshll.u32 (%p237_p6), %s1482_s28, 4  ;;  %s916_s8 = sshll.u32 (%p237_p6), %s1483_s30, 4  ;;  %s907_s29 = int_to_ptr.vmem [resolvable:$true] %s906_s29  ;;  %s917_s8 = int_to_ptr.vmem [resolvable:$true] %s916_s8 }
  0xaf   : > { %1044 = vmatpush3.bf16.msra.mxu0 %v967_v26  ;;  %v1904_v26 = vld [vmem:[%s1900_s1] sm:$0xff]  ;;  %v969_v41 = vcombine.low %v2263_v15, %v2262_v16  ;;  %v1911_v55 = vld [vmem:[%s1900_s1 + $0x18] sm:$0xff]  ;;  %v2267_v17 = vld [vmem:[#allocation33_spill] sm:$0xff]  ;;  %vm259_vm5 = vcmp.gt.f32.partialorder %v1602_v6, %v1918_v13  ;;  %s1356_s9 = scalar_lea.vmem (%p237_p6), %s907_s29, 128  ;;  %p1361_p8 = scmp.lt.s32.totalorder (%p237_p6), %s907_s29, %s907_s29 }
  0xb0   : > { %1045 = vmatprep.subr.bf16.mxu0 %v976_v42  ;;  %v985_v42 = vcombine.low %v1684_v47, %v1686_v48  ;;  %v2265_v1 = vld [vmem:[#allocation52_spill] sm:$0xff]  ;;  %v2266_v18 = vld [vmem:[#allocation34_spill] sm:$0xff]  ;;  %v2268_v5 = vld [vmem:[#allocation23_spill] sm:$0xff]  ;;  %vm257_vm2 = vcmp.gt.f32.partialorder %v2249_v4, %v1904_v26  ;;  %vm260_vm4 = vcmp.gt.f32.partialorder %v1604_v7, %v1911_v55  ;;  %p1357_p7 = scmp.ne.s32.totalorder (%p237_p6), %s907_s29, %s1356_s9  ;;  %p1362_p9 = scmp.lt.s32.totalorder (%p237_p6), %s1356_s9, %s1356_s9 }
  0xb1   : > { %1068 = vmatpush3.bf16.msra.mxu1 %v984_v12  ;;  %v994_v0 = vcombine.low %v2265_v1, %v2264_v2  ;;  %vm258_vm1 = vcmp.gt.f32.partialorder %v2268_v5, %v251_v25  ;;  %v986_v12 = vcombine.low %v1688_v49, %v1690_v50  ;;  %v979_v5 = vcombine.low %v1660_v35, %v1662_v36  ;;  %v2269_v10 = vld [vmem:[#allocation55_spill] sm:$0xff]  ;;  %v2270_v8 = vld [vmem:[#allocation54_spill] sm:$0xff]  ;;  %vm1020_vm6 = vmpackc.low %vm260_vm4, %vm260_vm4 }
  0xb2   : > { %1069 = vmatprep.subr.bf16.mxu1 %v993_v28  ;;  %vm1016_vm3 = vmpackc.low %vm258_vm1, %vm258_vm1  ;;  %v2272_v20 = vld [vmem:[#allocation36_spill] sm:$0xff]  ;;  %v2273_v19 = vld [vmem:[#allocation35_spill] sm:$0xff]  ;;  %p1363_p10 = por (%p237_p6), %p1362_p9, %p1361_p8 }
  0xb3   : > { %1046 = vmatpush3.bf16.msra.mxu0 %v968_v11  ;;  %v970_v11 = vcombine.low %v2267_v17, %v2266_v18  ;;  %v2274_v9 = vld [vmem:[#allocation56_spill] sm:$0xff]  ;;  %v2282_v15 = vld [vmem:[#allocation47_spill] sm:$0xff]  ;;  %v2284_v17 = vld [vmem:[#allocation45_spill] sm:$0xff] }
  0xb4   : > { %1047 = vmatprep.subr.bf16.mxu0 %v977_v27  ;;  %v2157_v27 = vmov 0.0   ;;  %v2285_v18 = vld [vmem:[#allocation60_spill] sm:$0xff]  ;;  %vm1018_vm7 = vmpackc.low %vm257_vm2, %vm257_vm2  ;;  %p1364_p11 = pnand (%p237_p6), %p1363_p10, %p1357_p7 }
  0xb5   : > { %v960_v28 = vsel %vm258_vm1, 1.0, %v2157_v27  ;;  %v959_v1 = vsel %vm257_vm2, 1.0, %v2157_v27  ;;  %1070 = vmatpush3.bf16.msra.mxu1 %v985_v42  ;;  %v995_v27 = vcombine.low %v2270_v8, %v2269_v10  ;;  %v2159_v42 = vmov 1.0|1.0   ;;  %vm1022_vm9 = vmpackc.low %vm259_vm5, %vm259_vm5  ;;  %v2298_v26 = vld [vmem:[#allocation80_spill] sm:$0xff] }
  0xb6   : > { %v859_v25 = vmul.f32 %v960_v28, %v1596_v3  ;;  %v858_v2 = vmul.f32 %v959_v1, %v1596_v3  ;;  %1071 = vmatprep.subr.bf16.mxu1 %v994_v0  ;;  %1017 = vmatprep.mubr.msk.bf16.mxu0 %vm1016_vm3, %v2159_v42  ;;  %v971_v28 = vcombine.low %v2273_v19, %v2272_v20  ;;  %v2286_v19 = vld [vmem:[#allocation59_spill] sm:$0xff]  ;;  %v2302_v13 = vld [vmem:[#allocation64_spill] sm:$0xff] }
  0xb7   : > { %1048 = vmatpush3.bf16.msra.mxu0 %v969_v41  ;;  %v2271_v41 = vmov 0.0   ;;  %1021 = vmatprep.mubr.msk.bf16.mxu1 %vm1020_vm6, %v2159_v42  ;;  %v987_v8 = vcombine.low %v1692_v51, %v1694_v52 }
  0xb8   : > { %1049 = vmatprep.subr.bf16.mxu0 %v978_v58  ;;  %v961_v1 = vsel %vm259_vm5, 1.0, %v2271_v41  ;;  %v865_v0 = vadd.f32 %v859_v25, %v858_v2  ;;  %v996_v2 = vcombine.low %v2274_v9, %v1730_v57  ;;  %v2275_v25 = vld [vmem:[#allocation44_spill] sm:$0xff] }
  0xb9   : > { %v860_v58 = vmul.f32 %v961_v1, %v1596_v3  ;;  %1072 = vmatpush3.bf16.msra.mxu1 %v986_v12  ;;  %v988_v12 = vcombine.low %v1696_v53, %v1698_v54  ;;  %v2277_v1 = vld [vmem:[#allocation58_spill] sm:$0xff]  ;;  %v2281_v9 = vld [vmem:[#allocation48_spill] sm:$0xff] }
  0xba   : > { %1073 = vmatprep.subr.bf16.mxu1 %v995_v27  ;;  %v989_v16 = vcombine.low %v2282_v15, %v2281_v9  ;;  %v2291_v9 = vld [vmem:[#allocation78_spill] sm:$0xff]  ;;  %v2292_v15 = vld [vmem:[#allocation77_spill] sm:$0xff] }
  0xbb   : > { %1050 = vmatpush3.bf16.msra.mxu0 %v970_v11  ;;  %v1957_v10 = vadd.f32 %v865_v0, %v860_v58  ;;  %v972_v11 = vcombine.low %v1632_v21, %v1634_v22  ;;  %v2278_v0 = vld [vmem:[#allocation57_spill] sm:$0xff] }
  0xbc   : > { %1051 = vmatprep.subr.bf16.mxu0 %v979_v5  ;;  %v2276_v5 = vld [vmem:[#allocation43_spill] sm:$0xff]  ;;  %v997_v58 = vcombine.low %v2278_v0, %v2277_v1  ;;  %v2290_v0 = vld [vmem:[#allocation49_spill] sm:$0xff] }
  0xbd   : > { %1074 = vmatpush3.bf16.msra.mxu1 %v987_v8  ;;  %v981_v27 = vcombine.low %v2276_v5, %v2275_v25  ;;  %v2280_v8 = vld [vmem:[#allocation37_spill] sm:$0xff]  ;;  %v998_v25 = vcombine.low %v2286_v19, %v2285_v18  ;;  %v2287_v5 = vld [vmem:[#allocation40_spill] sm:$0xff] }
  0xbe   : > { %1075 = vmatprep.subr.bf16.mxu1 %v996_v2  ;;  %v2295_v18 = vld [vmem:[#allocation61_spill] sm:$0xff] }
  0xbf   : > { %1052 = vmatpush3.bf16.msra.mxu0 %v971_v28  ;;  %v2279_v28 = vld [vmem:[#allocation38_spill] sm:$0xff] }
  0xc0   : > { %1053 = vmatprep.subr.bf16.mxu0 %v980_v14  ;;  %v973_v42 = vcombine.low %v2280_v8, %v2279_v28  ;;  %v2283_v14 = vld [vmem:[#allocation46_spill] sm:$0xff]  ;;  %v1984_v28 = vld [vmem:[%s1900_s1 + $0x28] sm:$0xff] }
  0xc1   : > { %1076 = vmatpush3.bf16.msra.mxu1 %v988_v12  ;;  %v982_v2 = vcombine.low %v2284_v17, %v2283_v14  ;;  %v2289_v12 = vld [vmem:[#allocation50_spill] sm:$0xff]  ;;  %v2297_v8 = vld [vmem:[#allocation93_spill] sm:$0xff] }
  0xc2   : > { %1077 = vmatprep.subr.bf16.mxu1 %v997_v58  ;;  %v990_v20 = vcombine.low %v2290_v0, %v2289_v12  ;;  %v256_v58 = vld [vmem:[%s1900_s1 + $0x30] sm:$0xff] }
  0xc3   : > { %1054 = vmatpush3.bf16.msra.mxu0 %v972_v11  ;;  %v2288_v11 = vld [vmem:[#allocation39_spill] sm:$0xff]  ;;  %v2294_v17 = vld [vmem:[#allocation62_spill] sm:$0xff] }
  0xc4   : > { %1055 = vmatprep.subr.bf16.mxu0 %v981_v27  ;;  %v974_v1 = vcombine.low %v2288_v11, %v2287_v5  ;;  %v1007_v27 = vcombine.low %v2292_v15, %v2291_v9  ;;  %v999_v19 = vcombine.low %v2295_v18, %v2294_v17  ;;  %v2300_v5 = vld [vmem:[#allocation26_spill] sm:$0xff]  ;;  %v2303_v11 = vld [vmem:[#allocation63_spill] sm:$0xff]  ;;  %v2305_v9 = vld [vmem:[#allocation81_spill] sm:$0xff] }
  0xc5   : > { %1078 = vmatpush3.bf16.msra.mxu1 %v989_v16  ;;  %v2293_v16 = vld [vmem:[#allocation25_spill] sm:$0xff]  ;;  %vm263_vm10 = vcmp.gt.f32.partialorder %v2300_v5, %v256_v58  ;;  %v2304_v0 = vld [vmem:[#allocation82_spill] sm:$0xff] }
  0xc6   : > { %1079 = vmatprep.subr.bf16.mxu1 %v998_v25  ;;  %vm262_vm8 = vcmp.gt.f32.partialorder %v2293_v16, %v1984_v28  ;;  %v2016_v12 = vsel %vm263_vm10, 1.0, %v2271_v41  ;;  %v1009_v15 = vcombine.low %v2305_v9, %v2304_v0  ;;  %v2306_v58 = vld [vmem:[#allocation66_spill] sm:$0xff]  ;;  %v2307_v17 = vld [vmem:[#allocation65_spill] sm:$0xff]  ;;  %v2316_v9 = vld [vmem:[#allocation88_spill] sm:$0xff] }
  0xc7   : > { %1056 = vmatpush3.bf16.msra.mxu0 %v973_v42  ;;  %v2296_v42 = vld [vmem:[#allocation94_spill] sm:$0xff]  ;;  %vm1024_vm11 = vmpackc.low %vm262_vm8, %vm262_vm8  ;;  %v1001_v18 = vcombine.low %v2307_v17, %v2306_v58  ;;  %v2313_v5 = vld [vmem:[#allocation85_spill] sm:$0xff]  ;;  %v964_v55 = vsel %vm262_vm8, 1.0, %v2271_v41 }
  0xc8   : > { %1057 = vmatprep.subr.bf16.mxu0 %v982_v2  ;;  %v1015_v14 = vcombine.low %v2297_v8, %v2296_v42  ;;  %v2299_v2 = vld [vmem:[#allocation79_spill] sm:$0xff] }
  0xc9   : > { %1080 = vmatpush3.bf16.msra.mxu1 %v990_v20  ;;  %v1008_v25 = vcombine.low %v2299_v2, %v2298_v26  ;;  %v2301_v20 = vmov 1.0|1.0   ;;  %v2309_v42 = vld [vmem:[#allocation83_spill] sm:$0xff] }
  0xca   : > { %1120 = vmatprep.subr.bf16.mxu1 %v2271_v41  ;;  %v2311_v26 = vld [vmem:[#allocation67_spill] sm:$0xff] }
  0xcb   : > { %1058 = vmatpush3.bf16.msra.mxu0 %v974_v1  ;;  %v1000_v1 = vcombine.low %v2303_v11, %v2302_v13  ;;  %v2314_v11 = vld [vmem:[#allocation70_spill] sm:$0xff]  ;;  %v2319_v17 = vld [vmem:[#allocation71_spill] sm:$0xff] }
  0xcc   : > { %1087 = vmatprep.subr.bf16.mxu0 %v1007_v27  ;;  %1023 = vmatmul.mubr.msk.bf16.vlgmr.msra.gmra.mrb[0].mxu1 %vm1022_vm9, %v2301_v20  ;;  %v284_v27 = vpack.c.bf16 %v2016_v12, %v2016_v12 }
  0xcd   : > { %1121 = vmatpush3.bf16.msra.mxu1 %v1015_v14  ;;  %1122 = vmatprep.mubr.msk.bf16.mxu1 %vm1481_vm12, %v2271_v41  ;;  %v2310_v14 = vld [vmem:[#allocation68_spill] sm:$0xff] }
  0xce   : > { %1019 = vmatmul.mubr.msk.bf16.vlgmr.msra.gmra.mrb[0].mxu0 %vm1018_vm7, %v2301_v20  ;;  %1126 = vmatprep.subr.bf16.mxu1 %v2271_v41  ;;  %v1002_v2 = vcombine.low %v2311_v26, %v2310_v14  ;;  %v2323_v26 = vld [vmem:[#allocation73_spill] sm:$0xff] }
  0xcf   : > { %1088 = vmatpush3.bf16.msra.mxu0 %v999_v19  ;;  %1025 = vmatprep.mubr.msk.bf16.mxu0 %vm1024_vm11, %v2301_v20  ;;  %v2308_v19 = vld [vmem:[#allocation84_spill] sm:$0xff] }
  0xd0   : > { %1089 = vmatprep.subr.bf16.mxu0 %v1008_v25  ;;  %v1010_v8 = vcombine.low %v2309_v42, %v2308_v19  ;;  %v2312_v25 = vld [vmem:[#allocation86_spill] sm:$0xff]  ;;  %v2321_v42 = vld [vmem:[#allocation89_spill] sm:$0xff] }
  0xd1   : > { %v1011_v13 = vcombine.low %v2313_v5, %v2312_v25  ;;  %v2320_v19 = vld [vmem:[#allocation90_spill] sm:$0xff]  ;;  %v2325_v5 = vld [vmem:[#allocation91_spill] sm:$0xff] }
  0xd2   : > { %v1013_v14 = vcombine.low %v2321_v42, %v2320_v19  ;;  %v2332_v19 = vld [vmem:[#allocation97_spill] sm:$0xff] }
  0xd3   : > { %1090 = vmatpush3.bf16.msra.mxu0 %v1000_v1  ;;  %v2315_v1 = vld [vmem:[#allocation69_spill] sm:$0xff] }
  0xd4   : > { %1091 = vmatprep.subr.bf16.mxu0 %v1009_v15  ;;  %1123 = vmatmul.mubr.msk.bf16.vlgmr.msra.gmra.mrb[4].mxu1 %vm585_vm13, %v284_v27  ;;  %v1003_v0 = vcombine.low %v2315_v1, %v2314_v11  ;;  %v2317_v15 = vld [vmem:[#allocation87_spill] sm:$0xff]  ;;  %v2318_v27 = vld [vmem:[#allocation72_spill] sm:$0xff] }
  0xd5   : > { %1142 = vmatprep.mubr.msk.bf16.mxu1 %vm1481_vm12, %v2271_v41  ;;  %v1012_v58 = vcombine.low %v2317_v15, %v2316_v9  ;;  %v2326_v1 = vld [vmem:[#allocation76_spill] sm:$0xff]  ;;  %v2327_v9 = vld [vmem:[#allocation75_spill] sm:$0xff] }
  0xd6   : > { %v2328_v15 = vld [vmem:[#allocation24_spill] sm:$0xff] }
  0xd7   : > { %1092 = vmatpush3.bf16.msra.mxu0 %v1001_v18  ;;  %v1004_v18 = vcombine.low %v2319_v17, %v2318_v27  ;;  %v2330_v27 = vld [vmem:[#allocation95_spill] sm:$0xff] }
  0xd8   : > { %1093 = vmatprep.subr.bf16.mxu0 %v1010_v8  ;;  %v2322_v8 = vld [vmem:[#allocation74_spill] sm:$0xff] }
  0xd9   : > { %v1005_v25 = vcombine.low %v2323_v26, %v2322_v8  ;;  %v2334_v8 = vld [vmem:[#allocation99_spill] sm:$0xff] }
  0xdb   : > { %1094 = vmatpush3.bf16.msra.mxu0 %v1002_v2  ;;  %v2324_v2 = vld [vmem:[#allocation92_spill] sm:$0xff] }
  0xdc   : > { %1095 = vmatprep.subr.bf16.mxu0 %v1011_v13  ;;  %v1014_v11 = vcombine.low %v2325_v5, %v2324_v2  ;;  %v254_v13 = vld [vmem:[%s1900_s1 + $0x20] sm:$0xff]  ;;  %v2336_v2 = vld [vmem:[#allocation101_spill] sm:$0xff] }
  0xdd   : > { %vm261_vm14 = vcmp.gt.f32.partialorder %v2328_v15, %v254_v13  ;;  %v864_v13 = vmul.f32 %v2016_v12, %v1596_v3 }
  0xde   : > { %vm1026_vm15 = vmpackc.low %vm261_vm14, %vm261_vm14 }
  0xdf   : > { %1096 = vmatpush3.bf16.msra.mxu0 %v1003_v0  ;;  %v1006_v0 = vcombine.low %v2327_v9, %v2326_v1  ;;  %v2338_v1 = vld [vmem:[#allocation103_spill] sm:$0xff] }
  0xe0   : > { %1097 = vmatprep.subr.bf16.mxu0 %v1012_v58  ;;  %v2329_v58 = vld [vmem:[#allocation96_spill] sm:$0xff] }
  0xe1   : > { %v1031_v17 = vcombine.low %v2330_v27, %v2329_v58  ;;  %v2339_v27 = vld [vmem:[#allocation106_spill] sm:$0xff] }
  0xe3   : > { %1098 = vmatpush3.bf16.msra.mxu0 %v1004_v18  ;;  %1127 = vmatpush3.bf16.msra.mxu1 %v1031_v17  ;;  %v2331_v18 = vld [vmem:[#allocation98_spill] sm:$0xff]  ;;  %v2340_v17 = vld [vmem:[#allocation105_spill] sm:$0xff] }
  0xe4   : > { %1099 = vmatprep.subr.bf16.mxu0 %v1013_v14  ;;  %v1032_v42 = vcombine.low %v2332_v19, %v2331_v18  ;;  %1128 = vmatprep.subr.bf16.mxu1 %v2271_v41  ;;  %v2333_v14 = vld [vmem:[#allocation100_spill] sm:$0xff]  ;;  %v1036_v18 = vcombine.low %v2340_v17, %v2339_v27  ;;  %v963_v19 = vsel %vm261_vm14, 1.0, %v2271_v41 }
  0xe5   : > { %v1033_v26 = vcombine.low %v2334_v8, %v2333_v14  ;;  %v2341_v8 = vld [vmem:[#allocation107_spill] sm:$0xff] }
  0xe7   : > { %1100 = vmatpush3.bf16.msra.mxu0 %v1005_v25  ;;  %1129 = vmatpush3.bf16.msra.mxu1 %v1032_v42  ;;  %v2335_v25 = vld [vmem:[#allocation102_spill] sm:$0xff]  ;;  %v862_v42 = vmul.f32 %v963_v19, %v1596_v3 }
  0xe8   : > { %1101 = vmatprep.subr.bf16.mxu0 %v1014_v11  ;;  %1130 = vmatprep.subr.bf16.mxu1 %v2271_v41  ;;  %v1034_v5 = vcombine.low %v2336_v2, %v2335_v25  ;;  %v2337_v11 = vld [vmem:[#allocation104_spill] sm:$0xff]  ;;  %v863_v25 = vmul.f32 %v964_v55, %v1596_v3 }
  0xe9   : > { %v1035_v9 = vcombine.low %v2338_v1, %v2337_v11  ;;  %v1038_v11 = vcombine.low %v1836_v24, %v1838_v39 }
  0xeb   : > { %1102 = vmatpush3.bf16.msra.mxu0 %v1006_v0  ;;  %1131 = vmatpush3.bf16.msra.mxu1 %v1033_v26  ;;  %v962_v0 = vsel %vm260_vm4, 1.0, %v2271_v41  ;;  %v1037_v26 = vcombine.low %v2341_v8, %v1834_v23 }
  0xec   : > { %1132 = vmatprep.subr.bf16.mxu1 %v2271_v41  ;;  %v861_v58 = vmul.f32 %v962_v0, %v1596_v3 }
  0xee   : > { %1027 = vmatmul.mubr.msk.bf16.vlgmr.msra.gmra.mrb[4].mxu0 %vm1026_vm15, %v2301_v20  ;;  %v867_v14 = vadd.f32 %v1957_v10, %v861_v58  ;;  %v870_v10 = vsel %vm585_vm13, %v864_v13, 0.0  ;;  %v749_v13 = vmul.f32 0.2, %v1462_v56 }
  0xef   : > { %1133 = vmatpush3.bf16.msra.mxu1 %v1034_v5 }
  0xf0   : > { %1134 = vmatprep.subr.bf16.mxu1 %v2271_v41  ;;  %v868_v2 = vadd.f32 %v867_v14, %v862_v42 }
  0xf2   : > { %v869_v5 = vadd.f32 %v868_v2, %v863_v25 }
  0xf3   : > { %1135 = vmatpush3.bf16.msra.mxu1 %v1035_v9 }
  0xf4   : > { %1136 = vmatprep.subr.bf16.mxu1 %v2271_v41  ;;  %v871_v28 = vadd.f32 %v870_v10, %v869_v5  ;;  %v2342_v10 = vld [vmem:[#allocation113_spill] sm:$0xff] }
  0xf6   : > { %872 = vadd.xlane.f32.xlu0 %v871_v28 }
  0xf7   : > { %1137 = vmatpush3.bf16.msra.mxu1 %v1036_v18 }
  0xf8   : > { %1138 = vmatprep.subr.bf16.mxu1 %v2271_v41 }
  0xfb   : > { %1139 = vmatpush3.bf16.msra.mxu1 %v1037_v26 }
  0xfc   : > { %1140 = vmatprep.subr.bf16.mxu1 %v2271_v41 }
  0xff   : > { %1141 = vmatpush3.bf16.msra.mxu1 %v1038_v11  ;;  %v750_v11 = vmul.f32 %v2342_v10, %v749_v13 }
 0x19f   : > { %v1081_v9 = vpop.f32.mrb[0].mxu1 }
 0x1a0   : > { %v1082_v58 = vpop.f32.mrb[1].mxu1 }
 0x1a1   : > { %v1059_v1 = vpop.f32.mrb[0].mxu0  ;;  %v1083_v18 = vadd.f32 %v1082_v58, %v1081_v9  ;;  %v1084_v12 = vpop.f32.mrb[2].mxu1  ;;  %v751_v58 = vsub.f32 %v749_v13, %v750_v11 }
 0x1a2   : > { %v1060_v0 = vpop.f32.mrb[1].mxu0  ;;  %v1085_v42 = vpop.f32.mrb[3].mxu1 }
 0x1a3   : > { %v1061_v27 = vadd.f32 %v1060_v0, %v1059_v1  ;;  %v1062_v17 = vpop.f32.mrb[2].mxu0 }
 0x1a4   : > { %v1063_v19 = vpop.f32.mrb[3].mxu0 }
 0x1a5   : > { %v624_v14 = vadd.f32 %v1061_v27, %v1840_v40 }
 0x1a7   : > { %v664_v55 = vadd.f32 %v1083_v18, %v624_v14  ;;  %v743_v8 = vpop.f32.mrb[4].mxu1  ;;  %v873_v18 = vpop.xlane.xlu0 %872 }
 0x1a8   : > { %v1124_v26 = vpop.f32.mrb[5].mxu1  ;;  %v874_v12 = vrot.slane %v873_v18, 4 }
 0x1a9   : > { %v746_v25 = vpop.f32.mrb[6].mxu1 }
 0x1aa   : > { %v1125_v2 = vpop.f32.mrb[7].mxu1  ;;  %v875_v19 = vadd.f32 %v874_v12, %v873_v18 }
 0x1ac   : > { %v876_v42 = vrot.slane %v875_v19, 2 }
 0x1ae   : > { %v877_v14 = vadd.f32 %v876_v42, %v875_v19  ;;  %v2345_v42 = vld [vmem:[#allocation108_spill] sm:$0xff] }
 0x1b0   : > { %v878_v26 = vrot.slane %v877_v14, 1 }
 0x1b2   : > { %v879_v25 = vadd.f32 %v878_v26, %v877_v14 }
 0x1b4   : > { %1146 = vpush %v879_v25  ;;  %v2346_v25 = vld [vmem:[#allocation109_spill] sm:$0xff] }
 0x1c1   : > { %v1103_v5 = vpop.f32.mrb[4].mxu0 }
 0x1c2   : > { %v1104_v28 = vpop.f32.mrb[5].mxu0 }
 0x1c3   : > { %v1105_v4 = vadd.f32 %v1104_v28, %v1103_v5  ;;  %v1106_v1 = vpop.f32.mrb[6].mxu0 }
 0x1c4   : > { %v1107_v0 = vpop.f32.mrb[7].mxu0 }
 0x1c5   : > { %v704_v9 = vadd.f32 %v1105_v4, %v664_v55 }
 0x1c7   : > { %v744_v17 = vadd.f32 %v743_v8, %v704_v9  ;;  %v2344_v9 = vld [vmem:[#allocation111_spill] sm:$0xff] }
 0x1c9   : > { %v752_v56 = vadd.f32 %v751_v58, %v744_v17  }
 0x1cb   : > { %vm753_vm0 = vcmp.gt.f32.partialorder %v752_v56, 0.5 }
 0x1cc   : > { %vm1039_vm1 = vmpackc.low %vm753_vm0, %vm753_vm0  ;;  %v1029_v55 = vsel %vm753_vm0, 1.0, %v2271_v41  }
 0x1cd   : > { %1143 = vmatmul.mubr.msk.bf16.vlgmr.msra.gmra.mrb[8].mxu1 %vm1039_vm1, %v2301_v20  ;;  %v882_v27 = vmul.f32 %v1029_v55, %v1596_v3  ;;  %v2343_v20 = vld [vmem:[#allocation112_spill] sm:$0xff] }
 0x1ce   : > { %v851_v28 = vmul.f32 0.2, %v2343_v20 }
 0x1cf   : > { %883 = vadd.xlane.f32.xlu0 %v882_v27 }
 0x1d0   : > { %v852_v58 = vmul.f32 %v2344_v9, %v851_v28 }
 0x1d2   : > { %v853_v18 = vsub.f32 %v851_v28, %v852_v58 }
 0x1e5   : > { %s1147_s25 = spop %1146 }
 0x1e6   : > { %v881_v1 = vstv %s1147_s25 }
 0x25c   : > { %v884_v4 = vpop.xlane.xlu0 %883 }
 0x25d   : > { %v885_v8 = vrot.slane %v884_v4, 4 }
 0x25f   : > { %v886_v2 = vadd.f32 %v885_v8, %v884_v4 }
 0x261   : > { %v887_v13 = vrot.slane %v886_v2, 2 }
 0x263   : > { %v888_v5 = vadd.f32 %v887_v13, %v886_v2  ;;  %v2347_v13 = vld [vmem:[#allocation110_spill] sm:$0xff] }
 0x265   : > { %v889_v10 = vrot.slane %v888_v5, 1 }
 0x267   : > { %v890_v11 = vadd.f32 %v889_v10, %v888_v5 }
 0x269   : > { %1148 = vpush %v890_v11 }
 0x29a   : > { %s1149_s27 = spop %1148 }
 0x29b   : > { %v892_v0 = vstv %s1149_s27 }
 0x29c   : > { %v893_v17 = vadd.f32 %v892_v0, %v881_v1 }
 0x29e   : > { %v1150_v27 = vtrunc.f32 %v893_v17 }
 0x2a0   : > { %v1151_v12 = vcvt.f32.s32 %v1150_v27  ;;  %v845_v19 = vpop.f32.mrb[8].mxu1 }
 0x2a1   : > { %v846_v14 = vadd.f32 %v2345_v42, %v845_v19  ;;  %v1144_v26 = vpop.f32.mrb[9].mxu1 }
 0x2a2   : > { %v895_v4 = vadd.s32 %v2346_v25, %v1151_v12   ;;  %v848_v8 = vpop.f32.mrb[10].mxu1 }
 0x2a3   : > { %v854_v42 = vadd.f32 %v853_v18, %v846_v14   ;;  %v1145_v2 = vpop.f32.mrb[11].mxu1  ;;  %239 = sbr.rel (!%p237_p6) target bundleno = 170 (0xaa), region = 84 }
 0x2a4   : > { %v2348_v25 = vmov %v895_v4  ;;  %899 = vst [vmem:[#allocation14] sm:$0xff] (%p237_p6), %v895_v4 }
 0x2a5   : > { %vm855_vm2 = vcmp.gt.f32.partialorder %v854_v42, 0.5 }
 0x2a6   : > { %v1041_v41 = vsel %vm855_vm2, 1.0, %v2271_v41  }
 0x2a7   : > { %v896_v5 = vadd.f32 %v2347_v13, %v1041_v41  }
 0x2a9   : > { %v2349_v26 = vmov %v896_v5  ;;  %v897_v10 = vmul.f32 (%p237_p6), 0.05, %v896_v5 }
 0x2ab   :  { %898 = vst [vmem:[#allocation13] sm:$0xff] %v897_v10 }
 0x2ac   :  { %1367 = shalt.err (!%p1364_p11)
}
 0x2ad   :  { %s1368_s12 = scalar_lea.hbm %s2153_s6, 128 }
 0x2ae   :  { %p1369_p12 = scmp.ne.s32.totalorder %s2153_s6, %s1368_s12  ;;  %p1372_p13 = scmp.lt.u32.totalorder %s1368_s12, %s2153_s6 }
 0x2b0   :  { %p1374_p0 = pnand %p1372_p13, %p1369_p12 }
 0x2b2   :  { %1377 = shalt.err (!%p1374_p0)
}
 0x2b3   :  { %909 = dma.vmem_to_hbm [thread:$0]  %s907_s29, 128, %s2153_s6, [#allocation4]  }
 0x2b4   :  { %s1378_s17 = scalar_lea.vmem %s917_s8, 128  ;;  %p1383_p2 = scmp.lt.s32.totalorder %s917_s8, %s917_s8 }
 0x2b5   :  { %p1379_p1 = scmp.ne.s32.totalorder %s917_s8, %s1378_s17  ;;  %p1384_p3 = scmp.lt.s32.totalorder %s1378_s17, %s1378_s17 }
 0x2b7   :  { %p1385_p4 = por %p1384_p3, %p1383_p2 }
 0x2b9   :  { %p1386_p5 = pnand %p1385_p4, %p1379_p1 }
 0x2bb   :  { %1389 = shalt.err (!%p1386_p5)
}
 0x2bc   :  { %s1390_s21 = scalar_lea.hbm %s2154_s7, 128 }
 0x2bd   :  { %p1391_p6 = scmp.ne.s32.totalorder %s2154_s7, %s1390_s21  ;;  %p1394_p7 = scmp.lt.u32.totalorder %s1390_s21, %s2154_s7 }
 0x2bf   :  { %p1396_p8 = pnand %p1394_p7, %p1391_p6 }
 0x2c1   :  { %1399 = shalt.err (!%p1396_p8)
}
 0x2c2   :  { %919 = dma.vmem_to_hbm [thread:$0]  %s917_s8, 128, %s2154_s7, [#allocation15]  }
 0x2c3   :  { %1436 = dma.done.wait [#allocation4], 128  }
 0x2c4   :  { %1437 = vsyncadd [#allocation4], 4294967168 }
 0x2c5   :  { %1438 = dma.done.wait [#allocation15], 128  }
 0x2c6   :  { %1439 = vsyncadd [#allocation15], 4294967168 }
 0x2c7   :  { %926 = vsyncpa [#allocation3], 1 }
 0x2c8   :  { %927 = vsyncpa [#allocation6], 1 }
 0x2c9   :  { %928 = vsyncpa [#allocation9], 1 }
 0x2ca   :  { %929 = vsyncpa [#allocation12], 1 }
 0x2cb   :  { %930 = vsyncpa [#allocation4], 1 }
 0x2cc   :  { %931 = vsyncpa [#allocation15], 1 }

</bundles_post_ra>
